<compile_context>
chip_gen: v6e
topology: v6e:2x2x1
jax: 0.10.0
libtpu: 0.0.40
codegen_flags: <defaults>
</compile_context>

<pallas_src>
import functools

import jax
import jax.numpy as jnp
from jax import lax
from jax.experimental import pallas as pl
from jax.experimental.pallas import tpu as pltpu

BN_EPS = 1e-5
_LANE = 128
_MAX_FUSED_ROWS = 256          # largest batch handled by the single fused kernel
_BATCH_TILE = 256              # rows per grid step in the tiled path
_VMEM_LIMIT = 48 * 1024 * 1024  # fits v7x (64 MiB physical) as well as v5e/v6e


def _pad_to(n, m):
    return ((n + m - 1) // m) * m


# ---------------------------------------------------------------------------
# Fused small-batch kernel: whole (padded) batch is one VMEM block, all three
# Linear -> BN(batch stats) -> Sigmoid layers run back-to-back in one launch.
# ---------------------------------------------------------------------------
def _bn_sigmoid_layer(h, w_ref, gb_ref, *, b_real, n_rows, eps):
    # Linear (bias dropped: train-mode BN mean-subtraction cancels it exactly).
    y = jnp.dot(h, w_ref[...], preferred_element_type=jnp.float32)
    if n_rows > b_real:
        # Zero padded batch rows so they do not pollute the batch statistics.
        row = lax.broadcasted_iota(jnp.int32, y.shape, 0)
        y = jnp.where(row < b_real, y, 0.0)
    inv_n = 1.0 / float(b_real)
    mean = jnp.sum(y, axis=0, keepdims=True) * inv_n
    ex2 = jnp.sum(y * y, axis=0, keepdims=True) * inv_n
    var = jnp.maximum(ex2 - mean * mean, 0.0)
    y_hat = (y - mean) * lax.rsqrt(var + eps)
    z = y_hat * gb_ref[0:1, :] + gb_ref[1:2, :]
    return jax.nn.sigmoid(z)


def _fused_kernel(x_ref, w1_ref, gb1_ref, w2_ref, gb2_ref, w3_ref, gb3_ref,
                  o_ref, *, b_real, n_rows, eps, act_dtype):
    h = _bn_sigmoid_layer(x_ref[...], w1_ref, gb1_ref,
                          b_real=b_real, n_rows=n_rows, eps=eps).astype(act_dtype)
    h = _bn_sigmoid_layer(h, w2_ref, gb2_ref,
                          b_real=b_real, n_rows=n_rows, eps=eps).astype(act_dtype)
    h = _bn_sigmoid_layer(h, w3_ref, gb3_ref,
                          b_real=b_real, n_rows=n_rows, eps=eps)
    o_ref[...] = h.astype(o_ref.dtype)


# ---------------------------------------------------------------------------
# Batch-tiled per-layer kernel with two-phase BN (global batch statistics).
# grid = (phase, batch_tile); phase 0 accumulates sum / sumsq over the whole
# batch into VMEM scratch, phase 1 recomputes y and normalizes with the global
# stats, applies affine + sigmoid and writes the lane-dense output block.
# ---------------------------------------------------------------------------
def _layer2pass_kernel(x_ref, w_ref, gb_ref, o_ref, sum_ref, sq_ref,
                       *, b_real, bt, eps, mask_rows):
    p = pl.program_id(0)
    i = pl.program_id(1)

    @pl.when((p == 0) & (i == 0))
    def _():
        sum_ref[...] = jnp.zeros_like(sum_ref)
        sq_ref[...] = jnp.zeros_like(sq_ref)

    y = jnp.dot(x_ref[...], w_ref[...], preferred_element_type=jnp.float32)
    if mask_rows:
        row = i * bt + lax.broadcasted_iota(jnp.int32, y.shape, 0)
        y = jnp.where(row < b_real, y, 0.0)

    @pl.when(p == 0)
    def _():
        sum_ref[...] += jnp.sum(y, axis=0, keepdims=True)
        sq_ref[...] += jnp.sum(y * y, axis=0, keepdims=True)

    @pl.when(p == 1)
    def _():
        inv_n = 1.0 / float(b_real)
        mean = sum_ref[...] * inv_n
        var = jnp.maximum(sq_ref[...] * inv_n - mean * mean, 0.0)
        y_hat = (y - mean) * lax.rsqrt(var + eps)
        z = y_hat * gb_ref[0:1, :] + gb_ref[1:2, :]
        o_ref[...] = jax.nn.sigmoid(z).astype(o_ref.dtype)


def _layer_gridded(h, w, gb, *, b_real, bt, eps, out_dtype):
    b_pad, f_in = h.shape
    f_out = w.shape[1]
    n_tiles = b_pad // bt
    kernel = functools.partial(_layer2pass_kernel, b_real=b_real, bt=bt, eps=eps,
                               mask_rows=(b_pad > b_real))
    return pl.pallas_call(
        kernel,
        out_shape=jax.ShapeDtypeStruct((b_pad, f_out), out_dtype),
        grid_spec=pltpu.PrefetchScalarGridSpec(
            num_scalar_prefetch=0,
            grid=(2, n_tiles),
            in_specs=[
                pl.BlockSpec((bt, f_in), lambda p, i: (i, 0)),
                pl.BlockSpec((f_in, f_out), lambda p, i: (0, 0)),   # weights resident
                pl.BlockSpec((2, f_out), lambda p, i: (0, 0)),      # gamma/beta resident
            ],
            out_specs=pl.BlockSpec((bt, f_out), lambda p, i: (i, 0)),
            scratch_shapes=[pltpu.VMEM((1, f_out), jnp.float32),
                            pltpu.VMEM((1, f_out), jnp.float32)]),
        compiler_params=pltpu.CompilerParams(
            # TODO(synk): batch axis stays "arbitrary" so BN stats remain global;
            # making it "parallel" on v7x megacore needs a cross-core stats reduction.
            dimension_semantics=("arbitrary", "arbitrary"),
            vmem_limit_bytes=_VMEM_LIMIT),
    )(h, w, gb)


# ---------------------------------------------------------------------------
# Wrapper
# ---------------------------------------------------------------------------
@functools.partial(jax.jit, static_argnames=("n_in", "n_h", "n_out", "use_bf16"))
def stacked_ae_forward(x_nchw, packed, *, n_in, n_h, n_out, use_bf16=False):
    """x_nchw: (B, 1, n_in, n_in) f32 -> (B, n_out*n_out) f32 (train-mode BN)."""
    B = x_nchw.shape[0]
    d_in, d_out = n_in * n_in, n_out * n_out
    f_in = _pad_to(d_in, _LANE)
    f_out = _pad_to(d_out, _LANE)
    cdt = jnp.bfloat16 if use_bf16 else jnp.float32

    x = x_nchw.reshape(B, d_in)
    if B <= _MAX_FUSED_ROWS:
        bt = _pad_to(B, 8)
        b_pad = bt
    else:
        bt = _BATCH_TILE
        b_pad = _pad_to(B, bt)
    x = jnp.pad(x, ((0, b_pad - B), (0, f_in - d_in))).astype(cdt)

    w1 = packed["w1"].astype(cdt)
    w2 = packed["w2"].astype(cdt)
    w3 = packed["w3"].astype(cdt)
    gb1, gb2, gb3 = packed["gb1"], packed["gb2"], packed["gb3"]

    if b_pad <= _MAX_FUSED_ROWS:
        kernel = functools.partial(_fused_kernel, b_real=B, n_rows=b_pad,
                                   eps=BN_EPS, act_dtype=cdt)
        vmem = pl.BlockSpec(memory_space=pltpu.MemorySpace.VMEM)
        out = pl.pallas_call(
            kernel,
            out_shape=jax.ShapeDtypeStruct((b_pad, f_out), jnp.float32),
            in_specs=[vmem] * 7,
            out_specs=vmem,
            compiler_params=pltpu.CompilerParams(vmem_limit_bytes=_VMEM_LIMIT),
        )(x, w1, gb1, w2, gb2, w3, gb3)
    else:
        h = x
        for w, gb, out_dtype in ((w1, gb1, cdt), (w2, gb2, cdt),
                                 (w3, gb3, jnp.float32)):
            h = _layer_gridded(h, w, gb, b_real=B, bt=bt, eps=BN_EPS,
                               out_dtype=out_dtype)
        out = h

    return out[:B, :d_out].astype(jnp.float32)


# ---------------------------------------------------------------------------
# Parameters (PyTorch-like), packing, and pure-JAX reference
# ---------------------------------------------------------------------------
def init_params(key, n_in, n_h, n_out):
    """Deterministic synthetic params (PyTorch-style fan-in uniform init, with bias)."""
    dims = [(n_in * n_in, n_h), (n_h, n_h), (n_h, n_out * n_out)]
    params = {}
    keys = jax.random.split(key, 3 * 4)
    for li, (fan_in, fan_out) in enumerate(dims, start=1):
        k_w, k_b, k_g, k_be = keys[(li - 1) * 4:(li - 1) * 4 + 4]
        bound = 1.0 / jnp.sqrt(jnp.float32(fan_in))
        params[f"w{li}"] = jax.random.uniform(   # stored (in, out) = torch (out,in).T
            k_w, (fan_in, fan_out), jnp.float32, -bound, bound)
        params[f"b{li}"] = jax.random.uniform(
            k_b, (1, fan_out), jnp.float32, -bound, bound)
        params[f"g{li}"] = 1.0 + 0.1 * jax.random.normal(k_g, (1, fan_out), jnp.float32)
        params[f"be{li}"] = 0.1 * jax.random.normal(k_be, (1, fan_out), jnp.float32)
    return params


def pack_params(params, n_in, n_h, n_out):
    """Drop the (BN-cancelled) biases, coalesce gamma/beta, zero-pad features to 128."""
    dims = [(n_in * n_in, n_h), (n_h, n_h), (n_h, n_out * n_out)]
    packed = {}
    for li, (fi, fo) in enumerate(dims, start=1):
        fi_p, fo_p = _pad_to(fi, _LANE), _pad_to(fo, _LANE)
        w = jnp.zeros((fi_p, fo_p), jnp.float32).at[:fi, :fo].set(params[f"w{li}"])
        gb = jnp.zeros((2, fo_p), jnp.float32)
        gb = gb.at[0, :fo].set(params[f"g{li}"].reshape(-1))
        gb = gb.at[1, :fo].set(params[f"be{li}"].reshape(-1))
        packed[f"w{li}"] = w
        packed[f"gb{li}"] = gb
    return packed


def reference_forward(x_nchw, params, n_in):
    """Pure-JAX reference mirroring the PyTorch forward (with bias, train-mode BN)."""
    B = x_nchw.shape[0]
    h = x_nchw.reshape(B, n_in * n_in)
    for li in (1, 2, 3):
        y = h @ params[f"w{li}"] + params[f"b{li}"]
        mean = jnp.mean(y, axis=0, keepdims=True)
        var = jnp.mean((y - mean) ** 2, axis=0, keepdims=True)
        y = (y - mean) / jnp.sqrt(var + BN_EPS)
        y = y * params[f"g{li}"] + params[f"be{li}"]
        h = jax.nn.sigmoid(y)
    return h


if __name__ == "__main__":
    # Small shapes consistent with the module: images (B, 1, n_in, n_in).
    n_in, n_h, n_out = 8, 32, 8

    key = jax.random.PRNGKey(0)
    k_x1, k_x2, k_p = jax.random.split(key, 3)
    params = init_params(k_p, n_in, n_h, n_out)
    packed = pack_params(params, n_in, n_h, n_out)

    # 1) Small batch -> fused single-launch kernel (f32 MXU path).
    B1 = 8
    x1 = jax.random.uniform(k_x1, (B1, 1, n_in, n_in), jnp.float32)
    out1 = jax.block_until_ready(
        stacked_ae_forward(x1, packed, n_in=n_in, n_h=n_h, n_out=n_out))
    ref1 = reference_forward(x1, params, n_in)
    assert out1.shape == (B1, n_out * n_out), out1.shape
    assert jnp.allclose(out1, ref1, atol=5e-4, rtol=5e-4), float(
        jnp.max(jnp.abs(out1 - ref1)))

    # 2) Larger batch -> batch-tiled two-phase-BN grid path (global batch stats,
    #    non-multiple batch exercises the row-masking of the padding).
    B2 = 300
    x2 = jax.random.uniform(k_x2, (B2, 1, n_in, n_in), jnp.float32)
    out2 = jax.block_until_ready(
        stacked_ae_forward(x2, packed, n_in=n_in, n_h=n_h, n_out=n_out))
    ref2 = reference_forward(x2, params, n_in)
    assert out2.shape == (B2, n_out * n_out), out2.shape
    assert jnp.allclose(out2, ref2, atol=5e-4, rtol=5e-4), float(
        jnp.max(jnp.abs(out2 - ref2)))

    # 3) bf16 MXU inputs (f32 accumulation, f32 BN/sigmoid) on the gridded path.
    out3 = jax.block_until_ready(
        stacked_ae_forward(x2, packed, n_in=n_in, n_h=n_h, n_out=n_out,
                           use_bf16=True))
    assert jnp.allclose(out3, ref2, atol=5e-2, rtol=0.0), float(
        jnp.max(jnp.abs(out3 - ref2)))

    print("KERNEL_OK")
</pallas_src>

<mosaic_0001>
module attributes {stable_mosaic.version = 11 : i64} {
  func.func @_fused_kernel(%arg0: memref<8x128xf32, #tpu.memory_space<vmem>>, %arg1: memref<128x128xf32, #tpu.memory_space<vmem>>, %arg2: memref<2x128xf32, #tpu.memory_space<vmem>>, %arg3: memref<128x128xf32, #tpu.memory_space<vmem>>, %arg4: memref<2x128xf32, #tpu.memory_space<vmem>>, %arg5: memref<128x128xf32, #tpu.memory_space<vmem>>, %arg6: memref<2x128xf32, #tpu.memory_space<vmem>>, %arg7: memref<8x128xf32, #tpu.memory_space<vmem>>) attributes {dimension_semantics = [], scalar_prefetch = 0 : i64, scratch_operands = 0 : i64, tpu.core_type = #tpu.core_type<tc>} {
    %c0 = arith.constant 0 : index
    %c0_0 = arith.constant 0 : index
    %0 = vector.load %arg0[%c0, %c0_0] : memref<8x128xf32, #tpu.memory_space<vmem>>, vector<8x128xf32>
    %c0_1 = arith.constant 0 : index
    %c0_2 = arith.constant 0 : index
    %1 = vector.load %arg1[%c0_1, %c0_2] : memref<128x128xf32, #tpu.memory_space<vmem>>, vector<128x128xf32>
    %cst = arith.constant dense<0.000000e+00> : vector<8x128xf32>
    %2 = tpu.matmul %0, %1, %cst {dimension_numbers = #tpu.dot_dimension_numbers<[1], [0], [0], [1], [0, 0, 1, 1], [], []>} : vector<8x128xf32>, vector<128x128xf32>, vector<8x128xf32> -> vector<8x128xf32>
    %cst_3 = arith.constant dense<0.000000e+00> : vector<128xf32>
    %3 = vector.multi_reduction <add>, %2, %cst_3 [0] : vector<8x128xf32> to vector<128xf32>
    %4 = vector.shape_cast %3 : vector<128xf32> to vector<1x128xf32>
    %cst_4 = arith.constant 1.250000e-01 : f32
    %5 = vector.broadcast %cst_4 : f32 to vector<1x128xf32>
    %6 = arith.mulf %4, %5 : vector<1x128xf32>
    %7 = arith.mulf %2, %2 : vector<8x128xf32>
    %cst_5 = arith.constant dense<0.000000e+00> : vector<128xf32>
    %8 = vector.multi_reduction <add>, %7, %cst_5 [0] : vector<8x128xf32> to vector<128xf32>
    %9 = vector.shape_cast %8 : vector<128xf32> to vector<1x128xf32>
    %cst_6 = arith.constant 1.250000e-01 : f32
    %10 = vector.broadcast %cst_6 : f32 to vector<1x128xf32>
    %11 = arith.mulf %9, %10 : vector<1x128xf32>
    %12 = arith.mulf %6, %6 : vector<1x128xf32>
    %13 = arith.subf %11, %12 : vector<1x128xf32>
    %cst_7 = arith.constant 0.000000e+00 : f32
    %14 = vector.broadcast %cst_7 : f32 to vector<1x128xf32>
    %15 = arith.maximumf %13, %14 : vector<1x128xf32>
    %16 = vector.broadcast %6 : vector<1x128xf32> to vector<8x128xf32>
    %17 = arith.subf %2, %16 : vector<8x128xf32>
    %cst_8 = arith.constant 9.99999974E-6 : f32
    %18 = vector.broadcast %cst_8 : f32 to vector<1x128xf32>
    %19 = arith.addf %15, %18 : vector<1x128xf32>
    %20 = math.rsqrt %19 : vector<1x128xf32>
    %21 = vector.broadcast %20 : vector<1x128xf32> to vector<8x128xf32>
    %22 = arith.mulf %17, %21 : vector<8x128xf32>
    %c0_9 = arith.constant 0 : index
    %c0_10 = arith.constant 0 : index
    %23 = vector.load %arg2[%c0_9, %c0_10] : memref<2x128xf32, #tpu.memory_space<vmem>>, vector<1x128xf32>
    %24 = vector.broadcast %23 : vector<1x128xf32> to vector<8x128xf32>
    %25 = arith.mulf %22, %24 : vector<8x128xf32>
    %c1 = arith.constant 1 : index
    %c0_11 = arith.constant 0 : index
    %26 = vector.load %arg2[%c1, %c0_11] : memref<2x128xf32, #tpu.memory_space<vmem>>, vector<1x128xf32>
    %27 = vector.broadcast %26 : vector<1x128xf32> to vector<8x128xf32>
    %28 = arith.addf %25, %27 : vector<8x128xf32>
    %29 = arith.negf %28 : vector<8x128xf32>
    %30 = math.exp %29 : vector<8x128xf32>
    %cst_12 = arith.constant 1.000000e+00 : f32
    %31 = vector.broadcast %cst_12 : f32 to vector<8x128xf32>
    %32 = arith.addf %31, %30 : vector<8x128xf32>
    %33 = arith.divf %31, %32 : vector<8x128xf32>
    %c0_13 = arith.constant 0 : index
    %c0_14 = arith.constant 0 : index
    %34 = vector.load %arg3[%c0_13, %c0_14] : memref<128x128xf32, #tpu.memory_space<vmem>>, vector<128x128xf32>
    %cst_15 = arith.constant dense<0.000000e+00> : vector<8x128xf32>
    %35 = tpu.matmul %33, %34, %cst_15 {dimension_numbers = #tpu.dot_dimension_numbers<[1], [0], [0], [1], [0, 0, 1, 1], [], []>} : vector<8x128xf32>, vector<128x128xf32>, vector<8x128xf32> -> vector<8x128xf32>
    %cst_16 = arith.constant dense<0.000000e+00> : vector<128xf32>
    %36 = vector.multi_reduction <add>, %35, %cst_16 [0] : vector<8x128xf32> to vector<128xf32>
    %37 = vector.shape_cast %36 : vector<128xf32> to vector<1x128xf32>
    %cst_17 = arith.constant 1.250000e-01 : f32
    %38 = vector.broadcast %cst_17 : f32 to vector<1x128xf32>
    %39 = arith.mulf %37, %38 : vector<1x128xf32>
    %40 = arith.mulf %35, %35 : vector<8x128xf32>
    %cst_18 = arith.constant dense<0.000000e+00> : vector<128xf32>
    %41 = vector.multi_reduction <add>, %40, %cst_18 [0] : vector<8x128xf32> to vector<128xf32>
    %42 = vector.shape_cast %41 : vector<128xf32> to vector<1x128xf32>
    %cst_19 = arith.constant 1.250000e-01 : f32
    %43 = vector.broadcast %cst_19 : f32 to vector<1x128xf32>
    %44 = arith.mulf %42, %43 : vector<1x128xf32>
    %45 = arith.mulf %39, %39 : vector<1x128xf32>
    %46 = arith.subf %44, %45 : vector<1x128xf32>
    %cst_20 = arith.constant 0.000000e+00 : f32
    %47 = vector.broadcast %cst_20 : f32 to vector<1x128xf32>
    %48 = arith.maximumf %46, %47 : vector<1x128xf32>
    %49 = vector.broadcast %39 : vector<1x128xf32> to vector<8x128xf32>
    %50 = arith.subf %35, %49 : vector<8x128xf32>
    %cst_21 = arith.constant 9.99999974E-6 : f32
    %51 = vector.broadcast %cst_21 : f32 to vector<1x128xf32>
    %52 = arith.addf %48, %51 : vector<1x128xf32>
    %53 = math.rsqrt %52 : vector<1x128xf32>
    %54 = vector.broadcast %53 : vector<1x128xf32> to vector<8x128xf32>
    %55 = arith.mulf %50, %54 : vector<8x128xf32>
    %c0_22 = arith.constant 0 : index
    %c0_23 = arith.constant 0 : index
    %56 = vector.load %arg4[%c0_22, %c0_23] : memref<2x128xf32, #tpu.memory_space<vmem>>, vector<1x128xf32>
    %57 = vector.broadcast %56 : vector<1x128xf32> to vector<8x128xf32>
    %58 = arith.mulf %55, %57 : vector<8x128xf32>
    %c1_24 = arith.constant 1 : index
    %c0_25 = arith.constant 0 : index
    %59 = vector.load %arg4[%c1_24, %c0_25] : memref<2x128xf32, #tpu.memory_space<vmem>>, vector<1x128xf32>
    %60 = vector.broadcast %59 : vector<1x128xf32> to vector<8x128xf32>
    %61 = arith.addf %58, %60 : vector<8x128xf32>
    %62 = arith.negf %61 : vector<8x128xf32>
    %63 = math.exp %62 : vector<8x128xf32>
    %cst_26 = arith.constant 1.000000e+00 : f32
    %64 = vector.broadcast %cst_26 : f32 to vector<8x128xf32>
    %65 = arith.addf %64, %63 : vector<8x128xf32>
    %66 = arith.divf %64, %65 : vector<8x128xf32>
    %c0_27 = arith.constant 0 : index
    %c0_28 = arith.constant 0 : index
    %67 = vector.load %arg5[%c0_27, %c0_28] : memref<128x128xf32, #tpu.memory_space<vmem>>, vector<128x128xf32>
    %cst_29 = arith.constant dense<0.000000e+00> : vector<8x128xf32>
    %68 = tpu.matmul %66, %67, %cst_29 {dimension_numbers = #tpu.dot_dimension_numbers<[1], [0], [0], [1], [0, 0, 1, 1], [], []>} : vector<8x128xf32>, vector<128x128xf32>, vector<8x128xf32> -> vector<8x128xf32>
    %cst_30 = arith.constant dense<0.000000e+00> : vector<128xf32>
    %69 = vector.multi_reduction <add>, %68, %cst_30 [0] : vector<8x128xf32> to vector<128xf32>
    %70 = vector.shape_cast %69 : vector<128xf32> to vector<1x128xf32>
    %cst_31 = arith.constant 1.250000e-01 : f32
    %71 = vector.broadcast %cst_31 : f32 to vector<1x128xf32>
    %72 = arith.mulf %70, %71 : vector<1x128xf32>
    %73 = arith.mulf %68, %68 : vector<8x128xf32>
    %cst_32 = arith.constant dense<0.000000e+00> : vector<128xf32>
    %74 = vector.multi_reduction <add>, %73, %cst_32 [0] : vector<8x128xf32> to vector<128xf32>
    %75 = vector.shape_cast %74 : vector<128xf32> to vector<1x128xf32>
    %cst_33 = arith.constant 1.250000e-01 : f32
    %76 = vector.broadcast %cst_33 : f32 to vector<1x128xf32>
    %77 = arith.mulf %75, %76 : vector<1x128xf32>
    %78 = arith.mulf %72, %72 : vector<1x128xf32>
    %79 = arith.subf %77, %78 : vector<1x128xf32>
    %cst_34 = arith.constant 0.000000e+00 : f32
    %80 = vector.broadcast %cst_34 : f32 to vector<1x128xf32>
    %81 = arith.maximumf %79, %80 : vector<1x128xf32>
    %82 = vector.broadcast %72 : vector<1x128xf32> to vector<8x128xf32>
    %83 = arith.subf %68, %82 : vector<8x128xf32>
    %cst_35 = arith.constant 9.99999974E-6 : f32
    %84 = vector.broadcast %cst_35 : f32 to vector<1x128xf32>
    %85 = arith.addf %81, %84 : vector<1x128xf32>
    %86 = math.rsqrt %85 : vector<1x128xf32>
    %87 = vector.broadcast %86 : vector<1x128xf32> to vector<8x128xf32>
    %88 = arith.mulf %83, %87 : vector<8x128xf32>
    %c0_36 = arith.constant 0 : index
    %c0_37 = arith.constant 0 : index
    %89 = vector.load %arg6[%c0_36, %c0_37] : memref<2x128xf32, #tpu.memory_space<vmem>>, vector<1x128xf32>
    %90 = vector.broadcast %89 : vector<1x128xf32> to vector<8x128xf32>
    %91 = arith.mulf %88, %90 : vector<8x128xf32>
    %c1_38 = arith.constant 1 : index
    %c0_39 = arith.constant 0 : index
    %92 = vector.load %arg6[%c1_38, %c0_39] : memref<2x128xf32, #tpu.memory_space<vmem>>, vector<1x128xf32>
    %93 = vector.broadcast %92 : vector<1x128xf32> to vector<8x128xf32>
    %94 = arith.addf %91, %93 : vector<8x128xf32>
    %95 = arith.negf %94 : vector<8x128xf32>
    %96 = math.exp %95 : vector<8x128xf32>
    %cst_40 = arith.constant 1.000000e+00 : f32
    %97 = vector.broadcast %cst_40 : f32 to vector<8x128xf32>
    %98 = arith.addf %97, %96 : vector<8x128xf32>
    %99 = arith.divf %97, %98 : vector<8x128xf32>
    %c0_41 = arith.constant 0 : index
    %c0_42 = arith.constant 0 : index
    %100 = vector.load %arg7[%c0_41, %c0_42] : memref<8x128xf32, #tpu.memory_space<vmem>>, vector<8x128xf32>
    tpu.vector_store %arg7[%c0_41, %c0_42], %99 {strides = array<i32>} : memref<8x128xf32, #tpu.memory_space<vmem>>, vector<8x128xf32>,
    return
  }
}

</mosaic_0001>

<bundles_post_ra>
// kernel: stacked_ae_forward.1
= control target key start
LH: loop header
LB: loop body
LE: loop exit
PB: predicated region body
PF: predicated region fallthrough
CT: control target
= control target key end

     0   :  { %12 = vsyncpa [#allocation3], 0  ;;  %s876_s0 = inlined_call_operand.vmem [shape: f32[8,128], index: 0, kind: input, shape index: {}]   ;;  %s877_s1 = inlined_call_operand.hbm [shape: f32[128,128], index: 1, kind: input, shape index: {}]   ;;  %s878_s2 = inlined_call_operand.vmem [shape: f32[2,128], index: 2, kind: input, shape index: {}]   ;;  %s879_s3 = inlined_call_operand.hbm [shape: f32[128,128], index: 3, kind: input, shape index: {}]   ;;  %s880_s4 = inlined_call_operand.vmem [shape: f32[2,128], index: 4, kind: input, shape index: {}]   ;;  %s881_s5 = inlined_call_operand.hbm [shape: f32[128,128], index: 5, kind: input, shape index: {}]   ;;  %s882_s6 = inlined_call_operand.vmem [shape: f32[2,128], index: 6, kind: input, shape index: {}]   ;;  %s883_s7 = inlined_call_operand.hbm [shape: f32[8,128], index: 7, kind: output, shape index: {}]  }
   0x1   :  { %13 = vsyncpa [#allocation6], 0 }
   0x2   :  { %14 = vsyncpa [#allocation4], 0  ;;  %s741_s24 = smov [#allocation5]   ;;  %s742_s26 = smov [#allocation2]  }
   0x3   :  { %s36_s25 = sshll.u32 %s741_s24, 4  ;;  %s22_s27 = sshll.u32 %s742_s26, 4  ;;  %s37_s25 = int_to_ptr.vmem [resolvable:$true] %s36_s25  ;;  %s23_s27 = int_to_ptr.vmem [resolvable:$true] %s22_s27 }
   0x4   :  { %s663_s28 = scalar_lea.vmem %s37_s25, 2048  ;;  %p668_p1 = scmp.lt.s32.totalorder %s37_s25, %s37_s25 }
   0x5   :  { %p664_p0 = scmp.ne.s32.totalorder %s37_s25, %s663_s28  ;;  %p669_p2 = scmp.lt.s32.totalorder %s663_s28, %s663_s28 }
   0x7   :  { %p670_p3 = por %p669_p2, %p668_p1 }
   0x9   :  { %p671_p4 = pnand %p670_p3, %p664_p0 }
   0xb   :  { %674 = shalt.err (!%p671_p4)
}
   0xc   :  { %s743_s29 = smov 128   ;;  %s744_s30 = smov 8  }
   0xd   :  { %42 = dma.hbm_to_vmem [thread:$0]  %s879_s3, 2048, %s37_s25, [#allocation6], %s743_s29, %s743_s29, %s744_s30  }
   0xe   :  { %s683_s10 = scalar_lea.vmem %s23_s27, 2048  ;;  %p688_p6 = scmp.lt.s32.totalorder %s23_s27, %s23_s27 }
   0xf   :  { %p684_p5 = scmp.ne.s32.totalorder %s23_s27, %s683_s10  ;;  %p689_p7 = scmp.lt.s32.totalorder %s683_s10, %s683_s10 }
  0x11   :  { %p690_p8 = por %p689_p7, %p688_p6 }
  0x13   :  { %p691_p9 = pnand %p690_p8, %p684_p5 }
  0x15   :  { %694 = shalt.err (!%p691_p9)
}
  0x16   :  { %28 = dma.hbm_to_vmem [thread:$0]  %s877_s1, 2048, %s23_s27, [#allocation3], %s743_s29, %s743_s29, %s744_s30  }
  0x17   :  { %s745_s13 = smov [#allocation7]  }
  0x18   :  { %s50_s14 = sshll.u32 %s745_s13, 4  ;;  %s51_s14 = int_to_ptr.vmem [resolvable:$true] %s50_s14 }
  0x19   :  { %s703_s15 = scalar_lea.vmem %s51_s14, 2048  ;;  %p708_p11 = scmp.lt.s32.totalorder %s51_s14, %s51_s14 }
  0x1a   :  { %p704_p10 = scmp.ne.s32.totalorder %s51_s14, %s703_s15  ;;  %p709_p12 = scmp.lt.s32.totalorder %s703_s15, %s703_s15 }
  0x1c   :  { %p710_p13 = por %p709_p12, %p708_p11 }
  0x1e   :  { %p711_p0 = pnand %p710_p13, %p704_p10 }
  0x20   :  { %714 = shalt.err (!%p711_p0)
}
  0x21   :  { %56 = dma.hbm_to_vmem [thread:$0]  %s881_s5, 2048, %s51_s14, [#allocation6], %s743_s29, %s743_s29, %s744_s30  }
  0x22   :  { %735 = dma.done.wait [#allocation3], 2048  }
  0x23   :  { %736 = vsyncadd [#allocation3], 4294965248 }
  0x24   :  { %737 = dma.done.wait [#allocation6], 4096  }
  0x25   :  { %738 = vsyncadd [#allocation6], 4294963200  ;;  %v746_v0 = vmov 0.0   ;;  %vm747_vm0 = vmmov 0   ;;  %v84_v1 = vld [vmem:[#allocation2 + $0x78] sm:$0xff]  ;;  %v83_v2 = vld [vmem:[#allocation2 + $0x70] sm:$0xff] }
  0x26   :  { %524 = vmatprep.subr.mxu0 %v746_v0  ;;  %556 = vmatprep.mubr.msk.f32.mxu0 %vm747_vm0, %v746_v0  ;;  %v82_v3 = vld [vmem:[#allocation2 + $0x68] sm:$0xff]  ;;  %v81_v4 = vld [vmem:[#allocation2 + $0x60] sm:$0xff]  ;;  %v80_v5 = vld [vmem:[#allocation2 + $0x58] sm:$0xff]  ;;  %s748_s26 = smov [#allocation8]  }
  0x27   :  { %559 = vmatprep.subr.mxu1 %v746_v0  ;;  %591 = vmatprep.mubr.msk.f32.mxu1 %vm747_vm0, %v746_v0  ;;  %v79_v6 = vld [vmem:[#allocation2 + $0x50] sm:$0xff]  ;;  %v78_v7 = vld [vmem:[#allocation2 + $0x48] sm:$0xff]  ;;  %v77_v8 = vld [vmem:[#allocation2 + $0x40] sm:$0xff]  ;;  %s454_s27 = sshll.u32 %s748_s26, 4  ;;  %s455_s27 = int_to_ptr.vmem [resolvable:$true] %s454_s27 }
  0x28   :  { %525 = vmatpush3.msra.mxu0 %v84_v1  ;;  %v76_v9 = vld [vmem:[#allocation2 + $0x38] sm:$0xff]  ;;  %v75_v10 = vld [vmem:[#allocation2 + $0x30] sm:$0xff]  ;;  %v74_v11 = vld [vmem:[#allocation2 + $0x28] sm:$0xff]  ;;  %s715_s28 = scalar_lea.vmem %s455_s27, 128  ;;  %p720_p2 = scmp.lt.s32.totalorder %s455_s27, %s455_s27 }
  0x29   :  { %526 = vmatprep.subr.mxu0 %v746_v0  ;;  %v73_v12 = vld [vmem:[#allocation2 + $0x20] sm:$0xff]  ;;  %v72_v13 = vld [vmem:[#allocation2 + $0x18] sm:$0xff]  ;;  %v71_v14 = vld [vmem:[#allocation2 + $0x10] sm:$0xff]  ;;  %p716_p1 = scmp.ne.s32.totalorder %s455_s27, %s715_s28  ;;  %p721_p3 = scmp.lt.s32.totalorder %s715_s28, %s715_s28 }
  0x2a   :  { %527 = vmatpush3.msra.mxu0 %v83_v2  ;;  %v70_v15 = vld [vmem:[#allocation2 + $0x8] sm:$0xff]  ;;  %v69_v16 = vld [vmem:[#allocation2] sm:$0xff]  ;;  %v210_v18 = vld [vmem:[#allocation5 + $0x78] sm:$0xff] }
  0x2b   :  { %528 = vmatprep.subr.mxu0 %v746_v0  ;;  %v68_v17 = vld [vmem:[%s876_s0] sm:$0xff]  ;;  %560 = vmatpush3.msra.mxu1 %v210_v18  ;;  %v209_v19 = vld [vmem:[#allocation5 + $0x70] sm:$0xff]  ;;  %v208_v20 = vld [vmem:[#allocation5 + $0x68] sm:$0xff]  ;;  %p722_p4 = por %p721_p3, %p720_p2 }
  0x2c   :  { %529 = vmatpush3.msra.mxu0 %v82_v3  ;;  %561 = vmatprep.subr.mxu1 %v746_v0  ;;  %v207_v21 = vld [vmem:[#allocation5 + $0x60] sm:$0xff]  ;;  %v206_v22 = vld [vmem:[#allocation5 + $0x58] sm:$0xff]  ;;  %v205_v23 = vld [vmem:[#allocation5 + $0x50] sm:$0xff] }
  0x2d   :  { %530 = vmatprep.subr.mxu0 %v746_v0  ;;  %562 = vmatpush3.msra.mxu1 %v209_v19  ;;  %v204_v24 = vld [vmem:[#allocation5 + $0x48] sm:$0xff]  ;;  %v203_v25 = vld [vmem:[#allocation5 + $0x40] sm:$0xff]  ;;  %v202_v26 = vld [vmem:[#allocation5 + $0x38] sm:$0xff]  ;;  %p723_p5 = pnand %p722_p4, %p716_p1 }
  0x2e   :  { %531 = vmatpush3.msra.mxu0 %v81_v4  ;;  %563 = vmatprep.subr.mxu1 %v746_v0  ;;  %v201_v27 = vld [vmem:[#allocation5 + $0x30] sm:$0xff]  ;;  %v200_v28 = vld [vmem:[#allocation5 + $0x28] sm:$0xff]  ;;  %v199_v29 = vld [vmem:[#allocation5 + $0x20] sm:$0xff] }
  0x2f   :  { %532 = vmatprep.subr.mxu0 %v746_v0  ;;  %564 = vmatpush3.msra.mxu1 %v208_v20  ;;  %v198_v30 = vld [vmem:[#allocation5 + $0x18] sm:$0xff]  ;;  %v197_v31 = vld [vmem:[#allocation5 + $0x10] sm:$0xff]  ;;  %v196_v32 = vld [vmem:[#allocation5 + $0x8] sm:$0xff] }
  0x30   :  { %533 = vmatpush3.msra.mxu0 %v80_v5  ;;  %565 = vmatprep.subr.mxu1 %v746_v0  ;;  %v195_v33 = vld [vmem:[#allocation5] sm:$0xff]  ;;  %v336_v3 = vld [vmem:[#allocation7 + $0x78] sm:$0xff]  ;;  %v335_v4 = vld [vmem:[#allocation7 + $0x70] sm:$0xff] }
  0x31   :  { %534 = vmatprep.subr.mxu0 %v746_v0  ;;  %566 = vmatpush3.msra.mxu1 %v207_v21  ;;  %v464_v57 = vld [vmem:[%s878_s2] ss:$0 sm:$0xff]  ;;  %v465_v59 = vld [vmem:[%s878_s2 + $0x1] ss:$0 sm:$0xff]  ;;  %v334_v5 = vld [vmem:[#allocation7 + $0x68] sm:$0xff] }
  0x32   :  { %535 = vmatpush3.msra.mxu0 %v79_v6  ;;  %567 = vmatprep.subr.mxu1 %v746_v0  ;;  %v333_v6 = vld [vmem:[#allocation7 + $0x60] sm:$0xff] }
  0x33   :  { %536 = vmatprep.subr.mxu0 %v746_v0  ;;  %568 = vmatpush3.msra.mxu1 %v206_v22  ;;  %v321_v18 = vld [vmem:[#allocation7] sm:$0xff] }
  0x34   :  { %537 = vmatpush3.msra.mxu0 %v78_v7  ;;  %569 = vmatprep.subr.mxu1 %v746_v0  ;;  %v332_v7 = vld [vmem:[#allocation7 + $0x58] sm:$0xff] }
  0x35   :  { %538 = vmatprep.subr.mxu0 %v746_v0  ;;  %570 = vmatpush3.msra.mxu1 %v205_v23 }
  0x36   :  { %539 = vmatpush3.msra.mxu0 %v77_v8  ;;  %571 = vmatprep.subr.mxu1 %v746_v0  ;;  %v331_v8 = vld [vmem:[#allocation7 + $0x50] sm:$0xff] }
  0x37   :  { %540 = vmatprep.subr.mxu0 %v746_v0  ;;  %572 = vmatpush3.msra.mxu1 %v204_v24 }
  0x38   :  { %541 = vmatpush3.msra.mxu0 %v76_v9  ;;  %573 = vmatprep.subr.mxu1 %v746_v0  ;;  %v330_v9 = vld [vmem:[#allocation7 + $0x48] sm:$0xff] }
  0x39   :  { %542 = vmatprep.subr.mxu0 %v746_v0  ;;  %574 = vmatpush3.msra.mxu1 %v203_v25 }
  0x3a   :  { %543 = vmatpush3.msra.mxu0 %v75_v10  ;;  %575 = vmatprep.subr.mxu1 %v746_v0  ;;  %v329_v10 = vld [vmem:[#allocation7 + $0x40] sm:$0xff] }
  0x3b   :  { %544 = vmatprep.subr.mxu0 %v746_v0  ;;  %576 = vmatpush3.msra.mxu1 %v202_v26 }
  0x3c   :  { %545 = vmatpush3.msra.mxu0 %v74_v11  ;;  %577 = vmatprep.subr.mxu1 %v746_v0  ;;  %v328_v11 = vld [vmem:[#allocation7 + $0x38] sm:$0xff] }
  0x3d   :  { %546 = vmatprep.subr.mxu0 %v746_v0  ;;  %578 = vmatpush3.msra.mxu1 %v201_v27 }
  0x3e   :  { %547 = vmatpush3.msra.mxu0 %v73_v12  ;;  %579 = vmatprep.subr.mxu1 %v746_v0  ;;  %v327_v12 = vld [vmem:[#allocation7 + $0x30] sm:$0xff] }
  0x3f   :  { %548 = vmatprep.subr.mxu0 %v746_v0  ;;  %580 = vmatpush3.msra.mxu1 %v200_v28 }
  0x40   :  { %549 = vmatpush3.msra.mxu0 %v72_v13  ;;  %581 = vmatprep.subr.mxu1 %v746_v0  ;;  %v326_v13 = vld [vmem:[#allocation7 + $0x28] sm:$0xff] }
  0x41   :  { %550 = vmatprep.subr.mxu0 %v746_v0  ;;  %582 = vmatpush3.msra.mxu1 %v199_v29 }
  0x42   :  { %551 = vmatpush3.msra.mxu0 %v71_v14  ;;  %583 = vmatprep.subr.mxu1 %v746_v0  ;;  %v325_v14 = vld [vmem:[#allocation7 + $0x20] sm:$0xff] }
  0x43   :  { %552 = vmatprep.subr.mxu0 %v746_v0  ;;  %584 = vmatpush3.msra.mxu1 %v198_v30 }
  0x44   :  { %553 = vmatpush3.msra.mxu0 %v70_v15  ;;  %585 = vmatprep.subr.mxu1 %v746_v0  ;;  %v324_v15 = vld [vmem:[#allocation7 + $0x18] sm:$0xff] }
  0x45   :  { %554 = vmatprep.subr.mxu0 %v746_v0  ;;  %586 = vmatpush3.msra.mxu1 %v197_v31 }
  0x46   :  { %555 = vmatpush3.msra.mxu0 %v69_v16  ;;  %587 = vmatprep.subr.mxu1 %v746_v0  ;;  %v323_v16 = vld [vmem:[#allocation7 + $0x10] sm:$0xff] }
  0x47   :  { %557 = vmatmul.mubr.f32.vlgmr.msra.gmra.mxu0 %v68_v17  ;;  %594 = vmatprep.subr.mxu0 %v746_v0  ;;  %v322_v17 = vld [vmem:[#allocation7 + $0x8] sm:$0xff] }
  0x48   :  { %626 = vmatprep.mubr.msk.f32.mxu0 %vm747_vm0, %v746_v0  ;;  %588 = vmatpush3.msra.mxu1 %v196_v32 }
  0x49   :  { %589 = vmatprep.subr.mxu1 %v746_v0  ;;  %595 = vmatpush3.msra.mxu0 %v336_v3 }
  0x4a   :  { %590 = vmatpush3.msra.mxu1 %v195_v33  ;;  %596 = vmatprep.subr.mxu0 %v746_v0 }
  0x4b   :  { %597 = vmatpush3.msra.mxu0 %v335_v4 }
  0x4c   :  { %598 = vmatprep.subr.mxu0 %v746_v0 }
  0x4d   :  { %599 = vmatpush3.msra.mxu0 %v334_v5 }
  0x4e   :  { %600 = vmatprep.subr.mxu0 %v746_v0 }
  0x4f   :  { %601 = vmatpush3.msra.mxu0 %v333_v6 }
  0x50   :  { %602 = vmatprep.subr.mxu0 %v746_v0 }
  0x51   :  { %603 = vmatpush3.msra.mxu0 %v332_v7 }
  0x52   :  { %604 = vmatprep.subr.mxu0 %v746_v0 }
  0x53   :  { %605 = vmatpush3.msra.mxu0 %v331_v8 }
  0x54   :  { %606 = vmatprep.subr.mxu0 %v746_v0 }
  0x55   :  { %607 = vmatpush3.msra.mxu0 %v330_v9 }
  0x56   :  { %608 = vmatprep.subr.mxu0 %v746_v0 }
  0x57   :  { %609 = vmatpush3.msra.mxu0 %v329_v10  ;;  %v470_v10 = vld [vmem:[%s882_s6] ss:$0 sm:$0xff] }
  0x58   :  { %610 = vmatprep.subr.mxu0 %v746_v0 }
  0x59   :  { %611 = vmatpush3.msra.mxu0 %v328_v11 }
  0x5a   :  { %612 = vmatprep.subr.mxu0 %v746_v0 }
  0x5b   :  { %613 = vmatpush3.msra.mxu0 %v327_v12  ;;  %v471_v12 = vld [vmem:[%s882_s6 + $0x1] ss:$0 sm:$0xff] }
  0x5c   :  { %614 = vmatprep.subr.mxu0 %v746_v0 }
  0x5d   :  { %615 = vmatpush3.msra.mxu0 %v326_v13 }
  0x5e   :  { %616 = vmatprep.subr.mxu0 %v746_v0 }
  0x5f   :  { %617 = vmatpush3.msra.mxu0 %v325_v14 }
  0x60   :  { %618 = vmatprep.subr.mxu0 %v746_v0 }
  0x61   :  { %619 = vmatpush3.msra.mxu0 %v324_v15 }
  0x62   :  { %620 = vmatprep.subr.mxu0 %v746_v0 }
  0x63   :  { %621 = vmatpush3.msra.mxu0 %v323_v16 }
  0x64   :  { %622 = vmatprep.subr.mxu0 %v746_v0 }
  0x65   :  { %623 = vmatpush3.msra.mxu0 %v322_v17 }
  0x66   :  { %624 = vmatprep.subr.mxu0 %v746_v0 }
  0x67   :  { %625 = vmatpush3.msra.mxu0 %v321_v18 }
 0x107   :  { %v151_v34 = vpop.f32.mrf.mxu0 }
 0x108   :  { %v155_v35 = vrot.slane %v151_v34, 4  ;;  %v162_v36 = vmul.f32 %v151_v34, %v151_v34 }
 0x109   :  { %v558_v37 = vpop.f32.mrf.mxu0 }
 0x10a   :  { %v156_v38 = vadd.f32 %v155_v35, %v151_v34  ;;  %v163_v39 = vrot.slane %v162_v36, 4 }
 0x10c   :  { %v157_v40 = vrot.slane %v156_v38, 2  ;;  %v164_v41 = vadd.f32 %v163_v39, %v162_v36 }
 0x10e   :  { %v158_v42 = vadd.f32 %v157_v40, %v156_v38  ;;  %v165_v43 = vrot.slane %v164_v41, 2 }
 0x110   :  { %v159_v44 = vrot.slane %v158_v42, 1  ;;  %v166_v45 = vadd.f32 %v165_v43, %v164_v41  ;;  %v467_v41 = vld [vmem:[%s880_s4] ss:$0 sm:$0xff]  ;;  %v468_v43 = vld [vmem:[%s880_s4 + $0x1] ss:$0 sm:$0xff] }
 0x112   :  { %v160_v46 = vadd.f32 %v159_v44, %v158_v42  ;;  %v167_v47 = vrot.slane %v166_v45, 1 }
 0x114   :  { %v161_v48 = vmul.f32 0.125, %v160_v46  ;;  %v168_v49 = vadd.f32 %v167_v47, %v166_v45 }
 0x116   :  { %v169_v50 = vmul.f32 0.125, %v168_v49  ;;  %v170_v51 = vmul.f32 %v161_v48, %v161_v48  ;;  %v173_v55 = vsub.f32 %v151_v34, %v161_v48 }
 0x118   :  { %v171_v52 = vsub.f32 %v169_v50, %v170_v51 }
 0x11a   :  { %v172_v53 = vmax.f32 %v171_v52, 0.0 }
 0x11c   :  { %v174_v54 = vadd.f32 1e-05, %v172_v53 }
 0x11e   :  { %637 = vrsqrt.f32 %v174_v54 }
 0x12b   :  { %v638_v56 = vpop.eup %637 }
 0x12c   :  { %v176_v58 = vmul.f32 %v638_v56, %v173_v55 }
 0x12e   :  { %v182_v60 = vmul.f32 %v464_v57, %v176_v58 }
 0x130   :  { %v188_v61 = vadd.f32 %v465_v59, %v182_v60 }
 0x132   :  { %v466_v62 = vmul.f32 -1.442695, %v188_v61 }
 0x134   :  { %639 = vpow2.f32 %v466_v62 }
 0x141   :  { %v640_v63 = vpop.eup %639 }
 0x142   :  { %v192_v1 = vadd.f32 1.0, %v640_v63 }
 0x144   :  { %641 = vrcp.f32 %v192_v1 }
 0x151   :  { %v642_v2 = vpop.eup %641 }
 0x152   :  { %592 = vmatmul.mubr.f32.vlgmr.msra.gmra.mxu1 %v642_v2 }
 0x212   :  { %v277_v19 = vpop.f32.mrf.mxu1 }
 0x213   :  { %v281_v20 = vrot.slane %v277_v19, 4  ;;  %v288_v21 = vmul.f32 %v277_v19, %v277_v19 }
 0x214   :  { %v593_v22 = vpop.f32.mrf.mxu1 }
 0x215   :  { %v282_v23 = vadd.f32 %v281_v20, %v277_v19  ;;  %v289_v24 = vrot.slane %v288_v21, 4 }
 0x217   :  { %v283_v25 = vrot.slane %v282_v23, 2  ;;  %v290_v26 = vadd.f32 %v289_v24, %v288_v21 }
 0x219   :  { %v284_v27 = vadd.f32 %v283_v25, %v282_v23  ;;  %v291_v28 = vrot.slane %v290_v26, 2 }
 0x21b   :  { %v285_v29 = vrot.slane %v284_v27, 1  ;;  %v292_v30 = vadd.f32 %v291_v28, %v290_v26 }
 0x21d   :  { %v286_v31 = vadd.f32 %v285_v29, %v284_v27  ;;  %v293_v32 = vrot.slane %v292_v30, 1 }
 0x21f   :  { %v287_v33 = vmul.f32 0.125, %v286_v31  ;;  %v294_v34 = vadd.f32 %v293_v32, %v292_v30 }
 0x221   :  { %v295_v35 = vmul.f32 0.125, %v294_v34  ;;  %v296_v36 = vmul.f32 %v287_v33, %v287_v33  ;;  %v299_v39 = vsub.f32 %v277_v19, %v287_v33 }
 0x223   :  { %v297_v0 = vsub.f32 %v295_v35, %v296_v36 }
 0x225   :  { %v298_v37 = vmax.f32 %v297_v0, 0.0 }
 0x227   :  { %v300_v38 = vadd.f32 1e-05, %v298_v37 }
 0x229   :  { %643 = vrsqrt.f32 %v300_v38 }
 0x236   :  { %v644_v40 = vpop.eup %643 }
 0x237   :  { %v302_v42 = vmul.f32 %v644_v40, %v299_v39 }
 0x239   :  { %v308_v44 = vmul.f32 %v467_v41, %v302_v42 }
 0x23b   :  { %v314_v45 = vadd.f32 %v468_v43, %v308_v44 }
 0x23d   :  { %v469_v46 = vmul.f32 -1.442695, %v314_v45 }
 0x23f   :  { %645 = vpow2.f32 %v469_v46 }
 0x24c   :  { %v646_v47 = vpop.eup %645 }
 0x24d   :  { %v318_v48 = vadd.f32 1.0, %v646_v47 }
 0x24f   :  { %647 = vrcp.f32 %v318_v48 }
 0x25c   :  { %v648_v49 = vpop.eup %647 }
 0x25d   :  { %627 = vmatmul.mubr.f32.vlgmr.msra.gmra.mxu0 %v648_v49 }
 0x31d   :  { %v403_v50 = vpop.f32.mrf.mxu0 }
 0x31e   :  { %v407_v51 = vrot.slane %v403_v50, 4  ;;  %v414_v52 = vmul.f32 %v403_v50, %v403_v50 }
 0x31f   :  { %v628_v53 = vpop.f32.mrf.mxu0 }
 0x320   :  { %v408_v54 = vadd.f32 %v407_v51, %v403_v50  ;;  %v415_v55 = vrot.slane %v414_v52, 4 }
 0x322   :  { %v409_v56 = vrot.slane %v408_v54, 2  ;;  %v416_v57 = vadd.f32 %v415_v55, %v414_v52 }
 0x324   :  { %v410_v58 = vadd.f32 %v409_v56, %v408_v54  ;;  %v417_v59 = vrot.slane %v416_v57, 2 }
 0x326   :  { %v411_v60 = vrot.slane %v410_v58, 1  ;;  %v418_v61 = vadd.f32 %v417_v59, %v416_v57 }
 0x328   :  { %v412_v62 = vadd.f32 %v411_v60, %v410_v58  ;;  %v419_v63 = vrot.slane %v418_v61, 1 }
 0x32a   :  { %v413_v1 = vmul.f32 0.125, %v412_v62  ;;  %v420_v2 = vadd.f32 %v419_v63, %v418_v61 }
 0x32c   :  { %v421_v3 = vmul.f32 0.125, %v420_v2  ;;  %v422_v4 = vmul.f32 %v413_v1, %v413_v1  ;;  %v425_v8 = vsub.f32 %v403_v50, %v413_v1 }
 0x32e   :  { %v423_v5 = vsub.f32 %v421_v3, %v422_v4 }
 0x330   :  { %v424_v6 = vmax.f32 %v423_v5, 0.0 }
 0x332   :  { %v426_v7 = vadd.f32 1e-05, %v424_v6 }
 0x334   :  { %649 = vrsqrt.f32 %v426_v7 }
 0x341   :  { %v650_v9 = vpop.eup %649 }
 0x342   :  { %v428_v11 = vmul.f32 %v650_v9, %v425_v8 }
 0x344   :  { %v434_v13 = vmul.f32 %v470_v10, %v428_v11 }
 0x346   :  { %v440_v14 = vadd.f32 %v471_v12, %v434_v13 }
 0x348   :  { %v472_v15 = vmul.f32 -1.442695, %v440_v14 }
 0x34a   :  { %651 = vpow2.f32 %v472_v15 }
 0x357   :  { %v652_v16 = vpop.eup %651 }
 0x358   :  { %v444_v17 = vadd.f32 1.0, %v652_v16 }
 0x35a   :  { %653 = vrcp.f32 %v444_v17 }
 0x367   :  { %v654_v18 = vpop.eup %653 }
 0x368   :  { %447 = vst [vmem:[#allocation8] sm:$0xff] %v654_v18 }
 0x369   :  { %726 = shalt.err (!%p723_p5)
}
 0x36a   :  { %457 = dma.vmem_to_hbm [thread:$0]  %s455_s27, 128, %s883_s7, [#allocation4]  }
 0x36b   :  { %739 = dma.done.wait [#allocation4], 128  }
 0x36c   :  { %740 = vsyncadd [#allocation4], 4294967168 }
 0x36d   :  { %461 = vsyncpa [#allocation3], 1 }
 0x36e   :  { %462 = vsyncpa [#allocation6], 1 }
 0x36f   :  { %463 = vsyncpa [#allocation4], 1 }

</bundles_post_ra>
